<compile_context>
chip_gen: v6e
topology: v6e:2x2x1
jax: 0.10.0
libtpu: 0.0.40
codegen_flags: <defaults>
</compile_context>

<pallas_src>
import functools
import math

import jax
import jax.numpy as jnp
from jax.experimental import pallas as pl
from jax.experimental.pallas import tpu as pltpu


def _arcface_kernel(x_ref, w_ref, label_ref, o_ref, wn_ref,
                    *, s, cos_m, sin_m, th, mm, tc):
    """One (class-tile, batch-tile) step of the ArcFace forward."""
    j = pl.program_id(0)          # class-tile index (outer grid axis)
    i = pl.program_id(1)          # batch-tile index (inner grid axis)

    eps2 = 1e-24                  # (1e-12)^2 : clamp the squared norm (F.normalize eps)

    # ---- normalize the weight tile once per class tile -------------------
    # The weight block index is constant over the inner (batch) axis, so the
    # DMA is issued only when j changes; gate the normalization the same way
    # and keep the normalized bf16 tile resident in VMEM scratch.
    @pl.when(i == 0)
    def _():
        w = w_ref[...].astype(jnp.float32)                              # (tc, D)
        inv_w = jax.lax.rsqrt(
            jnp.maximum(jnp.sum(w * w, axis=-1, keepdims=True), eps2))
        wn_ref[...] = (w * inv_w).astype(wn_ref.dtype)

    # ---- normalize the input tile (cost proportional to the x DMA) -------
    x = x_ref[...].astype(jnp.float32)                                  # (tb, D)
    inv_x = jax.lax.rsqrt(
        jnp.maximum(jnp.sum(x * x, axis=-1, keepdims=True), eps2))
    xn = (x * inv_x).astype(wn_ref.dtype)                               # bf16 MXU input

    # ---- cosine = xn @ wn^T on the MXU, f32 accumulate, no explicit .T ----
    cosine = jax.lax.dot_general(
        xn, wn_ref[...],
        dimension_numbers=(((1,), (1,)), ((), ())),
        preferred_element_type=jnp.float32)                             # (tb, tc)

    # ---- arcface margin, restricted to the label column ------------------
    label = label_ref[...]                                              # (tb, 1) int32
    class_ids = jax.lax.broadcasted_iota(jnp.int32, cosine.shape, 1) + j * tc
    is_label = class_ids == label                                       # (tb, tc)

    # cosine at each row's label column (0.0 when the label is not in this tile;
    # in that case is_label is all-False and phi is never used).
    cos_lab = jnp.sum(jnp.where(is_label, cosine, 0.0), axis=-1, keepdims=True)
    sin_lab = jnp.sqrt(jnp.maximum(1.0 - cos_lab * cos_lab, 0.0))       # (tb, 1)
    phi = cos_lab * cos_m - sin_lab * sin_m
    phi = jnp.where(cos_lab > th, phi, cos_lab - mm)                    # (tb, 1)

    o_ref[...] = (jnp.where(is_label, phi, cosine) * s).astype(o_ref.dtype)


def _round_up(v, mult):
    return (v + mult - 1) // mult * mult


def arc_margin_product(x, weight, label, *, s=30.0, m=0.5, tb=128, tc=512):
    """ArcMarginProduct forward.

    x:      (B, D) float32
    weight: (C, D) float32
    label:  (B,)   int32
    returns (B, C) float32 logits
    """
    B, D = x.shape
    C, D2 = weight.shape
    assert D == D2

    # Batch tile: multiple of 8 (sublanes). Class tile: multiple of 128
    # (lane-dense output stores, clean MXU mapping on all generations).
    tb = min(tb, _round_up(B, 8))
    tc = min(tc, _round_up(C, 128))
    Bp = _round_up(B, tb)
    Cp = _round_up(C, tc)

    xp = x if Bp == B else jnp.pad(x, ((0, Bp - B), (0, 0)))
    wp = weight if Cp == C else jnp.pad(weight, ((0, Cp - C), (0, 0)))
    lab = label.astype(jnp.int32)
    if Bp != B:
        # -1 never matches a class id, so padded rows get no margin correction.
        lab = jnp.pad(lab, ((0, Bp - B),), constant_values=-1)
    lab2d = lab.reshape(Bp, 1)

    nb, nc = Bp // tb, Cp // tc

    kernel = functools.partial(
        _arcface_kernel,
        s=float(s), cos_m=math.cos(m), sin_m=math.sin(m),
        th=math.cos(math.pi - m), mm=math.sin(math.pi - m) * m, tc=tc)

    bytes_accessed = (xp.size * xp.dtype.itemsize * nc   # x re-streamed per class tile
                      + wp.size * wp.dtype.itemsize      # weight streamed once
                      + Bp * Cp * 4                      # output
                      + Bp * 4 * nc)                     # labels
    cost = pl.CostEstimate(flops=2 * Bp * Cp * D,
                           transcendentals=Cp + 2 * Bp * nc,
                           bytes_accessed=int(bytes_accessed))

    out = pl.pallas_call(
        kernel,
        out_shape=jax.ShapeDtypeStruct((Bp, Cp), jnp.float32),
        grid_spec=pltpu.PrefetchScalarGridSpec(
            num_scalar_prefetch=0,
            grid=(nc, nb),                                    # class tiles outer, batch inner
            in_specs=[
                pl.BlockSpec((tb, D), lambda j, i: (i, 0)),   # x tile
                pl.BlockSpec((tc, D), lambda j, i: (j, 0)),   # weight tile (const over inner axis)
                pl.BlockSpec((tb, 1), lambda j, i: (i, 0)),   # labels for this batch tile
            ],
            out_specs=pl.BlockSpec((tb, tc), lambda j, i: (i, j)),
            scratch_shapes=[pltpu.VMEM((tc, D), jnp.bfloat16)],  # normalized weight tile
        ),
        compiler_params=pltpu.CompilerParams(
            # Outer (class) axis is fully independent -> shard across TCs on v7x.
            # Inner (batch) axis carries the wn scratch -> arbitrary.
            dimension_semantics=("parallel", "arbitrary"),
            vmem_limit_bytes=32 * 1024 * 1024),
        cost_estimate=cost,
    )(xp, wp, lab2d)

    return out[:B, :C]


def _xavier_uniform(key, shape, dtype=jnp.float32):
    fan_out, fan_in = shape
    bound = math.sqrt(6.0 / (fan_in + fan_out))
    return jax.random.uniform(key, shape, dtype, minval=-bound, maxval=bound)


def _reference(x, weight, label, s=30.0, m=0.5):
    # Pure-JAX f32 reference mirroring the PyTorch module.
    eps = 1e-12
    xn = x / jnp.maximum(jnp.linalg.norm(x, axis=-1, keepdims=True), eps)
    wn = weight / jnp.maximum(jnp.linalg.norm(weight, axis=-1, keepdims=True), eps)
    cosine = xn @ wn.T
    sine = jnp.sqrt(1.0 - jnp.clip(cosine ** 2, 0.0, 1.0))
    cos_m, sin_m = math.cos(m), math.sin(m)
    th, mm = math.cos(math.pi - m), math.sin(math.pi - m) * m
    phi = cosine * cos_m - sine * sin_m
    phi = jnp.where(cosine > th, phi, cosine - mm)
    one_hot = jax.nn.one_hot(label, weight.shape[0], dtype=jnp.float32)
    return (one_hot * phi + (1.0 - one_hot) * cosine) * s


if __name__ == "__main__":
    # Small shapes consistent with the module: batch=16, in_features=32,
    # out_features (classes)=256.  Tile sizes chosen so the toy problem still
    # exercises a (class, batch) grid, the class-offset one-hot and the
    # weight-normalization scratch reuse.
    B, D, C = 16, 32, 256

    key = jax.random.PRNGKey(0)
    kx, kw, kl = jax.random.split(key, 3)

    x = jax.random.normal(kx, (B, D), dtype=jnp.float32)
    weight = _xavier_uniform(kw, (C, D))
    label = jax.random.randint(kl, (B,), 0, C, dtype=jnp.int32)

    logits = arc_margin_product(x, weight, label, s=30.0, m=0.5, tb=8, tc=128)
    logits = jax.block_until_ready(logits)

    ref = _reference(x, weight, label, s=30.0, m=0.5)
    assert logits.shape == (B, C)
    # bf16 MXU inputs -> slightly looser tolerance than a pure-f32 compare.
    assert jnp.allclose(logits, ref, atol=2e-1, rtol=5e-2), (
        "max abs diff vs reference: %f" % float(jnp.max(jnp.abs(logits - ref))))
    print("KERNEL_OK")
</pallas_src>

<mosaic_0001>
module attributes {stable_mosaic.version = 11 : i64} {
  func.func @_arcface_kernel(%arg0: i32, %arg1: i32, %arg2: memref<8x32xf32, #tpu.memory_space<vmem>>, %arg3: memref<128x32xf32, #tpu.memory_space<vmem>>, %arg4: memref<8x1xi32, #tpu.memory_space<vmem>>, %arg5: memref<8x128xf32, #tpu.memory_space<vmem>>, %arg6: memref<128x32xbf16, #tpu.memory_space<vmem>>) attributes {dimension_semantics = [#tpu.dimension_semantics<parallel>, #tpu.dimension_semantics<arbitrary>], iteration_bounds = array<i64: 2, 2>, scalar_prefetch = 0 : i64, scratch_operands = 1 : i64, tpu.core_type = #tpu.core_type<tc>, window_params = [{transform_indices = @transform_0, window_bounds = array<i64: 8, 32>}, {transform_indices = @transform_1, window_bounds = array<i64: 128, 32>}, {transform_indices = @transform_2, window_bounds = array<i64: 8, 1>}, {transform_indices = @transform_3, window_bounds = array<i64: 8, 128>}]} {
    %c0_i32 = arith.constant 0 : i32
    %0 = arith.cmpi eq, %arg1, %c0_i32 : i32
    %1 = arith.extui %0 : i1 to i32
    %c0_i32_0 = arith.constant 0 : i32
    %2 = arith.cmpi ne, %1, %c0_i32_0 : i32
    scf.if %2 {
      %c0_19 = arith.constant 0 : index
      %c0_20 = arith.constant 0 : index
      %48 = vector.load %arg3[%c0_19, %c0_20] : memref<128x32xf32, #tpu.memory_space<vmem>>, vector<128x32xf32>
      %49 = arith.mulf %48, %48 : vector<128x32xf32>
      %cst_21 = arith.constant dense<0.000000e+00> : vector<128xf32>
      %50 = vector.multi_reduction <add>, %49, %cst_21 [1] : vector<128x32xf32> to vector<128xf32>
      %51 = vector.shape_cast %50 : vector<128xf32> to vector<128x1xf32>
      %cst_22 = arith.constant 1.000000e-24 : f32
      %52 = vector.broadcast %cst_22 : f32 to vector<128x1xf32>
      %53 = arith.maximumf %51, %52 : vector<128x1xf32>
      %54 = math.rsqrt %53 : vector<128x1xf32>
      %55 = vector.broadcast %54 : vector<128x1xf32> to vector<128x32xf32>
      %56 = arith.mulf %48, %55 : vector<128x32xf32>
      %57 = arith.truncf %56 : vector<128x32xf32> to vector<128x32xbf16>
      %c0_23 = arith.constant 0 : index
      %c0_24 = arith.constant 0 : index
      %58 = vector.load %arg6[%c0_23, %c0_24] : memref<128x32xbf16, #tpu.memory_space<vmem>>, vector<128x32xbf16>
      tpu.vector_store %arg6[%c0_23, %c0_24], %57 {strides = array<i32>} : memref<128x32xbf16, #tpu.memory_space<vmem>>, vector<128x32xbf16>,
    } else {
    }
    %c0 = arith.constant 0 : index
    %c0_1 = arith.constant 0 : index
    %3 = vector.load %arg2[%c0, %c0_1] : memref<8x32xf32, #tpu.memory_space<vmem>>, vector<8x32xf32>
    %4 = arith.mulf %3, %3 : vector<8x32xf32>
    %cst = arith.constant dense<0.000000e+00> : vector<8xf32>
    %5 = vector.multi_reduction <add>, %4, %cst [1] : vector<8x32xf32> to vector<8xf32>
    %6 = vector.shape_cast %5 : vector<8xf32> to vector<8x1xf32>
    %cst_2 = arith.constant 1.000000e-24 : f32
    %7 = vector.broadcast %cst_2 : f32 to vector<8x1xf32>
    %8 = arith.maximumf %6, %7 : vector<8x1xf32>
    %9 = math.rsqrt %8 : vector<8x1xf32>
    %10 = vector.broadcast %9 : vector<8x1xf32> to vector<8x32xf32>
    %11 = arith.mulf %3, %10 : vector<8x32xf32>
    %12 = arith.truncf %11 : vector<8x32xf32> to vector<8x32xbf16>
    %c0_3 = arith.constant 0 : index
    %c0_4 = arith.constant 0 : index
    %13 = vector.load %arg6[%c0_3, %c0_4] : memref<128x32xbf16, #tpu.memory_space<vmem>>, vector<128x32xbf16>
    %cst_5 = arith.constant dense<0.000000e+00> : vector<8x128xf32>
    %14 = tpu.matmul %12, %13, %cst_5 {dimension_numbers = #tpu.dot_dimension_numbers<[1], [1], [0], [0], [0, 0, 1, 0], [], []>} : vector<8x32xbf16>, vector<128x32xbf16>, vector<8x128xf32> -> vector<8x128xf32>
    %c0_6 = arith.constant 0 : index
    %c0_7 = arith.constant 0 : index
    %15 = vector.load %arg4[%c0_6, %c0_7] : memref<8x1xi32, #tpu.memory_space<vmem>>, vector<8x1xi32>
    %16 = tpu.iota {dimensions = array<i32: 1>} : vector<8x128xi32>
    %c128_i32 = arith.constant 128 : i32
    %17 = arith.muli %arg0, %c128_i32 : i32
    %18 = vector.broadcast %17 : i32 to vector<8x128xi32>
    %19 = arith.addi %16, %18 : vector<8x128xi32>
    %20 = vector.broadcast %15 : vector<8x1xi32> to vector<8x128xi32>
    %21 = arith.cmpi eq, %19, %20 : vector<8x128xi32>
    %cst_8 = arith.constant 0.000000e+00 : f32
    %22 = vector.broadcast %cst_8 : f32 to vector<8x128xf32>
    %23 = arith.select %21, %14, %22 : vector<8x128xi1>, vector<8x128xf32>
    %cst_9 = arith.constant dense<0.000000e+00> : vector<8xf32>
    %24 = vector.multi_reduction <add>, %23, %cst_9 [1] : vector<8x128xf32> to vector<8xf32>
    %25 = vector.shape_cast %24 : vector<8xf32> to vector<8x1xf32>
    %26 = arith.mulf %25, %25 : vector<8x1xf32>
    %cst_10 = arith.constant 1.000000e+00 : f32
    %27 = vector.broadcast %cst_10 : f32 to vector<8x1xf32>
    %28 = arith.subf %27, %26 : vector<8x1xf32>
    %cst_11 = arith.constant 0.000000e+00 : f32
    %29 = vector.broadcast %cst_11 : f32 to vector<8x1xf32>
    %30 = arith.maximumf %28, %29 : vector<8x1xf32>
    %31 = math.sqrt %30 : vector<8x1xf32>
    %cst_12 = arith.constant 0.87758255 : f32
    %32 = vector.broadcast %cst_12 : f32 to vector<8x1xf32>
    %33 = arith.mulf %25, %32 : vector<8x1xf32>
    %cst_13 = arith.constant 0.47942555 : f32
    %34 = vector.broadcast %cst_13 : f32 to vector<8x1xf32>
    %35 = arith.mulf %31, %34 : vector<8x1xf32>
    %36 = arith.subf %33, %35 : vector<8x1xf32>
    %cst_14 = arith.constant -0.87758255 : f32
    %37 = vector.broadcast %cst_14 : f32 to vector<8x1xf32>
    %38 = arith.cmpf ogt, %25, %37 : vector<8x1xf32>
    %cst_15 = arith.constant 0.239712775 : f32
    %39 = vector.broadcast %cst_15 : f32 to vector<8x1xf32>
    %40 = arith.subf %25, %39 : vector<8x1xf32>
    %41 = arith.select %38, %36, %40 : vector<8x1xi1>, vector<8x1xf32>
    %42 = vector.shape_cast %41 : vector<8x1xf32> to vector<8x1xf32>
    %43 = vector.broadcast %42 : vector<8x1xf32> to vector<8x128xf32>
    %44 = arith.select %21, %43, %14 : vector<8x128xi1>, vector<8x128xf32>
    %cst_16 = arith.constant 3.000000e+01 : f32
    %45 = vector.broadcast %cst_16 : f32 to vector<8x128xf32>
    %46 = arith.mulf %44, %45 : vector<8x128xf32>
    %c0_17 = arith.constant 0 : index
    %c0_18 = arith.constant 0 : index
    %47 = vector.load %arg5[%c0_17, %c0_18] : memref<8x128xf32, #tpu.memory_space<vmem>>, vector<8x128xf32>
    tpu.vector_store %arg5[%c0_17, %c0_18], %46 {strides = array<i32>} : memref<8x128xf32, #tpu.memory_space<vmem>>, vector<8x128xf32>,
    return
  }
  func.func @transform_0(%arg0: i32, %arg1: i32) -> (i32, i32) {
    %c0_i32 = arith.constant 0 : i32
    %c0_i32_0 = arith.constant 0 : i32
    return %arg1, %c0_i32 : i32, i32
  }
  func.func @transform_1(%arg0: i32, %arg1: i32) -> (i32, i32) {
    %c0_i32 = arith.constant 0 : i32
    %c0_i32_0 = arith.constant 0 : i32
    return %arg0, %c0_i32 : i32, i32
  }
  func.func @transform_2(%arg0: i32, %arg1: i32) -> (i32, i32) {
    %c0_i32 = arith.constant 0 : i32
    %c0_i32_0 = arith.constant 0 : i32
    return %arg1, %c0_i32 : i32, i32
  }
  func.func @transform_3(%arg0: i32, %arg1: i32) -> (i32, i32) {
    %c0_i32 = arith.constant 0 : i32
    return %arg1, %arg0 : i32, i32
  }
}

</mosaic_0001>

<bundles_post_ra>
// kernel: tpu_custom_call.1
= control target key start
LH: loop header
LB: loop body
LE: loop exit
PB: predicated region body
PF: predicated region fallthrough
CT: control target
= control target key end

     0   :  { %8 = vsyncpa [#allocation4], 0  ;;  %s1326_s0 = inlined_call_operand.vmem [shape: f32[16,32], index: 0, kind: input, shape index: {}]   ;;  %s1327_s1 = inlined_call_operand.vmem [shape: f32[256,32], index: 1, kind: input, shape index: {}]   ;;  %s1328_s2 = inlined_call_operand.vmem [shape: s32[16,1], index: 2, kind: input, shape index: {}]   ;;  %s1329_s3 = inlined_call_operand.hbm [shape: f32[16,256], index: 3, kind: output, shape index: {}]  }
   0x1   :  { %10 = vsyncpa [#allocation4 + $0x1], 0  ;;  %s1036_s12 = smov 0   ;;  %s1038_s13 = smov 0  }
   0x2   :  { %s1040_s14 = smov 0   ;;  %s1042_s15 = smov 0  }
   0x3   :  { %s1044_s16 = smov 0   ;;  %s1046_s17 = smov 0  }
   0x4   :  { %s1048_s18 = smov 0   ;;  %s1050_s19 = smov 0  }
   0x5 LB: > { %s711_s20 = sadd.s32 4294967295, %s1010_s19   ;;  %s712_s21 = sadd.s32 4294967294, %s1010_s19   ;;  %s1010_s19 = sphi %s1050_s19, %s16_s19   ;;  %s1006_s18 = sphi %s1048_s18, %s1343_s18   ;;  %s1002_s17 = sphi %s1046_s17, %s1342_s17   ;;  %s998_s16 = sphi %s1044_s16, %s1341_s16   ;;  %s994_s15 = sphi %s1042_s15, %s1340_s15   ;;  %s990_s14 = sphi %s1040_s14, %s1339_s14   ;;  %s986_s13 = sphi %s1038_s13, %s1338_s13   ;;  %s982_s12 = sphi %s1036_s12, %s1337_s12  }
   0x6   : > { %s25_s22 = sadd.s32 1, %s1002_s17  ;;  %s28_s23 = sadd.s32 1, %s1006_s18 }
   0x7   : > { %p26_p0 = scmp.ge.s32.totalorder %s25_s22, 2  ;;  %p125_p1 = scmp.ne.s32.totalorder %s990_s14, %s986_s13 }
   0x8   : > { %p126_p2 = scmp.eq.s32.totalorder %s711_s20, 3  ;;  %p131_p5 = scmp.ne.s32.totalorder %s986_s13, %s982_s12 }
   0x9   : > { %s1345_s22 = smov (%p26_p0, %s25_s22), 0  ;;  %s1347_s23 = smov (!%p26_p0, %s28_s23), %s1006_s18 }
   0xa   : > { %s110_s24 = ssub.s32 %s1002_s17, %s1345_s22  ;;  %p1087_p3 = por %p126_p2, %p125_p1 }
   0xb   : > { %p30_p4 = scmp.ge.s32.totalorder %s1347_s23, 2  ;;  %p132_p6 = scmp.eq.s32.totalorder %s712_s21, 3 }
   0xc   : > { %p715_p7 = scmp.ge.s32.totalorder %s1010_s19, 1  ;;  %p173_p9 = scmp.lt.s32.totalorder %s1010_s19, 5 }
   0xd   : > { %s1349_s23 = smov (%p30_p4, %s1347_s23), 0  ;;  %p1096_p8 = por %p132_p6, %p131_p5 }
   0xe   : > { %1333 = sst [smem:[#allocation6_spill]] %s1349_s23  ;;  %s111_s27 = ssub.s32 %s1006_s18, %s1349_s23 }
   0xf   : > { %s115_s28 = sadd.s32 1, %s990_s14  ;;  %s112_s29 = sor.u32 %s111_s27, %s110_s24 }
  0x10   : > { %p174_p10 = pnand %p715_p7, %p173_p9  ;;  %p113_p11 = scmp.eq.s32.totalorder %s112_s29, 0 }
  0x11   : > { %s1330_s4 = sand.u32 (!%p174_p10), 1, %s986_s13   ;;  %p205_p12 = scmp.lt.s32.totalorder (!%p174_p10), %s994_s15, 1 }
  0x12   : > { %s1105_s30 = scalar_select %p113_p11, %s990_s14, %s115_s28  }
  0x13   : > { %177 = sbr.rel (%p174_p10) target bundleno = 761 (0x2f9), region = 32  ;;  %s1111_s5 = sshll.u32 (!%p174_p10), %s1330_s4, 3 }
  0x14   : > { %s718_s6 = sshll.u32 (!%p174_p10), %s998_s16, 4  ;;  %s204_s23 = scalar_lea.vmem (!%p174_p10), [#allocation3], %s1111_s5 }
  0x15   : > { %p210_p13 = scmp.lt.s32.totalorder (!%p174_p10), %s718_s6, 31  ;;  %p721_p0 = scmp.ne.s32.totalorder (!%p174_p10), %s994_s15, 0 }
  0x18   : > { %s206_s7 = scalar_select %p205_p12, %s994_s15, 1 }
  0x19   : > { %s1351_s6 = smov (!%p210_p13, %s718_s6), 31  ;;  %223 = sbr.rel (%p721_p0) target bundleno = 222 (0xde), region = 36 }
  0x1a   : > { %s717_s8 = sshll.u32 %s206_s7, 3  ;;  %s719_s20 = sshll.u32 %s1351_s6, 3 }
  0x1b   : > { %s1118_s11 = scalar_lea.vmem %s1326_s0, %s717_s8  ;;  %s1123_s27 = scalar_lea.vmem %s1327_s1, %s719_s20 }
  0x1c   : > { %s1128_s4 = scalar_lea.vmem %s1328_s2, %s717_s8 }
  0x1e   : > { %v1133_v0 = vld [vmem:[%s1123_s27 + $0x10] sm:$0xff]  ;;  %vm256_vm0 = vcmask 261120   ;;  %v1136_v1 = vld [vmem:[%s1123_s27] sm:$0xff]  ;;  %v1139_v2 = vld [vmem:[%s1123_s27 + $0x18] sm:$0xff]  ;;  %vm417_vm1 = vcmask 257024  }
  0x1f   : > { %v242_v3 = vmul.f32 %v1133_v0, %v1133_v0  ;;  %v240_v4 = vmul.f32 %v1136_v1, %v1136_v1  ;;  %v243_v5 = vmul.f32 %v1139_v2, %v1139_v2  ;;  %v1148_v6 = vld [vmem:[%s1123_s27 + $0x8] sm:$0xff]  ;;  %v1156_v9 = vld [vmem:[%s1123_s27 + $0x20] sm:$0xff]  ;;  %v1167_v16 = vld [vmem:[%s1123_s27 + $0x38] sm:$0xff] }
  0x20   : > { %v241_v7 = vmul.f32 %v1148_v6, %v1148_v6  ;;  %v1153_v8 = vld [vmem:[%s1123_s27 + $0x28] sm:$0xff]  ;;  %v244_v15 = vmul.f32 %v1156_v9, %v1156_v9  ;;  %v1170_v17 = vld [vmem:[%s1123_s27 + $0x30] sm:$0xff]  ;;  %v247_v20 = vmul.f32 %v1167_v16, %v1167_v16  ;;  %v1182_v23 = vld [vmem:[%s1123_s27 + $0x40] sm:$0xff] }
  0x21   : > { %v263_v10 = vsel %vm256_vm0, %v242_v3, 0.0  ;;  %v257_v11 = vsel %vm256_vm0, %v240_v4, 0.0  ;;  %v266_v12 = vsel %vm256_vm0, %v243_v5, 0.0  ;;  %v245_v14 = vmul.f32 %v1153_v8, %v1153_v8  ;;  %v1179_v22 = vld [vmem:[%s1123_s27 + $0x48] sm:$0xff]  ;;  %v1191_v28 = vld [vmem:[%s1123_s27 + $0x58] sm:$0xff]  ;;  %v1194_v29 = vld [vmem:[%s1123_s27 + $0x50] sm:$0xff] }
  0x22   : > { %264 = vadd.xlane.f32.xlu1 %v263_v10  ;;  %258 = vadd.xlane.f32.xlu0 %v257_v11  ;;  %v260_v13 = vsel %vm256_vm0, %v241_v7, 0.0  ;;  %v269_v19 = vsel %vm256_vm0, %v244_v15, 0.0  ;;  %v246_v21 = vmul.f32 %v1170_v17, %v1170_v17  ;;  %v278_v24 = vsel %vm256_vm0, %v247_v20, 0.0  ;;  %v1203_v34 = vld [vmem:[%s1123_s27 + $0x68] sm:$0xff]  ;;  %v1206_v35 = vld [vmem:[%s1123_s27 + $0x60] sm:$0xff]  ;;  %v1215_v40 = vld [vmem:[%s1123_s27 + $0x78] sm:$0xff] }
  0x23   : > { %v272_v18 = vsel %vm256_vm0, %v245_v14, 0.0  ;;  %v249_v26 = vmul.f32 %v1179_v22, %v1179_v22  ;;  %v248_v27 = vmul.f32 %v1182_v23, %v1182_v23  ;;  %v251_v32 = vmul.f32 %v1191_v28, %v1191_v28  ;;  %v1218_v41 = vld [vmem:[%s1123_s27 + $0x70] sm:$0xff] }
  0x24   : > { %v275_v25 = vsel %vm256_vm0, %v246_v21, 0.0  ;;  %v250_v33 = vmul.f32 %v1194_v29, %v1194_v29  ;;  %v253_v38 = vmul.f32 %v1203_v34, %v1203_v34  ;;  %v252_v39 = vmul.f32 %v1206_v35, %v1206_v35 }
  0x25   : > { %v284_v30 = vsel %vm256_vm0, %v249_v26, 0.0  ;;  %v281_v31 = vsel %vm256_vm0, %v248_v27, 0.0  ;;  %v290_v36 = vsel %vm256_vm0, %v251_v32, 0.0  ;;  %v255_v44 = vmul.f32 %v1215_v40, %v1215_v40 }
  0x26   : > { %267 = vadd.xlane.f32.xlu1 %v266_v12  ;;  %261 = vadd.xlane.f32.xlu0 %v260_v13  ;;  %v287_v37 = vsel %vm256_vm0, %v250_v33, 0.0  ;;  %v296_v42 = vsel %vm256_vm0, %v253_v38, 0.0  ;;  %v293_v43 = vsel %vm256_vm0, %v252_v39, 0.0  ;;  %v254_v45 = vmul.f32 %v1218_v41, %v1218_v41 }
  0x27   : > { %v302_v46 = vsel %vm256_vm0, %v255_v44, 0.0 }
  0x28   : > { %v299_v47 = vsel %vm256_vm0, %v254_v45, 0.0 }
  0x2a   : > { %273 = vadd.xlane.f32.xlu1 %v272_v18  ;;  %270 = vadd.xlane.f32.xlu0 %v269_v19 }
  0x2e   : > { %279 = vadd.xlane.f32.xlu1 %v278_v24  ;;  %276 = vadd.xlane.f32.xlu0 %v275_v25 }
  0x32   : > { %285 = vadd.xlane.f32.xlu1 %v284_v30  ;;  %282 = vadd.xlane.f32.xlu0 %v281_v31 }
  0x36   : > { %291 = vadd.xlane.f32.xlu1 %v290_v36  ;;  %288 = vadd.xlane.f32.xlu0 %v287_v37 }
  0x3a   : > { %297 = vadd.xlane.f32.xlu1 %v296_v42  ;;  %294 = vadd.xlane.f32.xlu0 %v293_v43 }
  0x3e   : > { %303 = vadd.xlane.f32.xlu1 %v302_v46  ;;  %300 = vadd.xlane.f32.xlu0 %v299_v47 }
  0xab   : > { %v265_v48 = vpop.xlane.xlu1 %264  ;;  %v259_v49 = vpop.xlane.xlu0 %258 }
  0xac   : > { %v307_v50 = vmax.f32 %v265_v48, 1e-24  ;;  %v305_v51 = vmax.f32 %v259_v49, 1e-24 }
  0xae   : > { %873 = vrsqrt.f32 %v307_v50 }
  0xaf   : > { %875 = vrsqrt.f32 %v305_v51  ;;  %v268_v52 = vpop.xlane.xlu1 %267  ;;  %v262_v53 = vpop.xlane.xlu0 %261 }
  0xb0   : > { %v308_v54 = vmax.f32 %v268_v52, 1e-24  ;;  %v306_v55 = vmax.f32 %v262_v53, 1e-24 }
  0xb2   : > { %877 = vrsqrt.f32 %v308_v54 }
  0xb3   : > { %879 = vrsqrt.f32 %v306_v55  ;;  %v274_v56 = vpop.xlane.xlu1 %273  ;;  %v271_v57 = vpop.xlane.xlu0 %270 }
  0xb4   : > { %v310_v58 = vmax.f32 %v274_v56, 1e-24  ;;  %v309_v59 = vmax.f32 %v271_v57, 1e-24 }
  0xb6   : > { %881 = vrsqrt.f32 %v310_v58 }
  0xb7   : > { %883 = vrsqrt.f32 %v309_v59  ;;  %v280_v60 = vpop.xlane.xlu1 %279  ;;  %v277_v61 = vpop.xlane.xlu0 %276 }
  0xb8   : > { %v312_v62 = vmax.f32 %v280_v60, 1e-24  ;;  %v311_v63 = vmax.f32 %v277_v61, 1e-24 }
  0xba   : > { %885 = vrsqrt.f32 %v312_v62 }
  0xbb   : > { %v874_v3 = vpop.eup %873  ;;  %887 = vrsqrt.f32 %v311_v63  ;;  %v286_v4 = vpop.xlane.xlu1 %285 }
  0xbc   : > { %v283_v5 = vpop.xlane.xlu0 %282  ;;  %v876_v7 = vpop.eup %875  ;;  %v339_v10 = vmul.f32 %v874_v3, %v1133_v0  ;;  %v314_v11 = vmax.f32 %v286_v4, 1e-24 }
  0xbd   : > { %v313_v12 = vmax.f32 %v283_v5, 1e-24  ;;  %v337_v13 = vmul.f32 %v876_v7, %v1136_v1 }
  0xbe   : > { %v756_v14 = vpack.c.bf16 %v339_v10, %v339_v10  ;;  %889 = vrsqrt.f32 %v314_v11 }
  0xbf   : > { %v878_v15 = vpop.eup %877  ;;  %v754_v18 = vpack.c.bf16 %v337_v13, %v337_v13  ;;  %891 = vrsqrt.f32 %v313_v12  ;;  %v292_v19 = vpop.xlane.xlu1 %291 }
  0xc0   : > { %v289_v20 = vpop.xlane.xlu0 %288  ;;  %v880_v21 = vpop.eup %879  ;;  %420 = vst.msk [vmem:[#allocation2 + $0x8] sm:$0xf] %vm417_vm1, %v756_v14  ;;  %v340_v24 = vmul.f32 %v878_v15, %v1139_v2  ;;  %v316_v25 = vmax.f32 %v292_v19, 1e-24 }
  0xc1   : > { %v315_v26 = vmax.f32 %v289_v20, 1e-24  ;;  %418 = vst.msk [vmem:[#allocation2] sm:$0xf] %vm417_vm1, %v754_v18  ;;  %v338_v0 = vmul.f32 %v880_v21, %v1148_v6 }
  0xc2   : > { %v757_v27 = vpack.c.bf16 %v340_v24, %v340_v24  ;;  %893 = vrsqrt.f32 %v316_v25 }
  0xc3   : > { %v882_v1 = vpop.eup %881  ;;  %v755_v30 = vpack.c.bf16 %v338_v0, %v338_v0  ;;  %895 = vrsqrt.f32 %v315_v26  ;;  %v298_v31 = vpop.xlane.xlu1 %297 }
  0xc4   : > { %v295_v32 = vpop.xlane.xlu0 %294  ;;  %v884_v33 = vpop.eup %883  ;;  %421 = vst.msk [vmem:[#allocation2 + $0xc] sm:$0xf] %vm417_vm1, %v757_v27  ;;  %v342_v36 = vmul.f32 %v882_v1, %v1153_v8  ;;  %v318_v37 = vmax.f32 %v298_v31, 1e-24 }
  0xc5   : > { %v317_v2 = vmax.f32 %v295_v32, 1e-24  ;;  %419 = vst.msk [vmem:[#allocation2 + $0x4] sm:$0xf] %vm417_vm1, %v755_v30  ;;  %v341_v38 = vmul.f32 %v884_v33, %v1156_v9 }
  0xc6   : > { %v759_v39 = vpack.c.bf16 %v342_v36, %v342_v36  ;;  %897 = vrsqrt.f32 %v318_v37 }
  0xc7   : > { %v886_v6 = vpop.eup %885  ;;  %v758_v42 = vpack.c.bf16 %v341_v38, %v341_v38  ;;  %899 = vrsqrt.f32 %v317_v2  ;;  %v304_v43 = vpop.xlane.xlu1 %303 }
  0xc8   : > { %v301_v44 = vpop.xlane.xlu0 %300  ;;  %v888_v45 = vpop.eup %887  ;;  %423 = vst.msk [vmem:[#allocation2 + $0x14] sm:$0xf] %vm417_vm1, %v759_v39  ;;  %v344_v46 = vmul.f32 %v886_v6, %v1167_v16  ;;  %v320_v47 = vmax.f32 %v304_v43, 1e-24 }
  0xc9   : > { %v319_v8 = vmax.f32 %v301_v44, 1e-24  ;;  %422 = vst.msk [vmem:[#allocation2 + $0x10] sm:$0xf] %vm417_vm1, %v758_v42  ;;  %v343_v48 = vmul.f32 %v888_v45, %v1170_v17 }
  0xca   : > { %v761_v49 = vpack.c.bf16 %v344_v46, %v344_v46  ;;  %901 = vrsqrt.f32 %v320_v47 }
  0xcb   : > { %v890_v9 = vpop.eup %889  ;;  %v760_v50 = vpack.c.bf16 %v343_v48, %v343_v48  ;;  %903 = vrsqrt.f32 %v319_v8 }
  0xcc   : > { %v892_v51 = vpop.eup %891  ;;  %425 = vst.msk [vmem:[#allocation2 + $0x1c] sm:$0xf] %vm417_vm1, %v761_v49  ;;  %v346_v52 = vmul.f32 %v890_v9, %v1179_v22 }
  0xcd   : > { %424 = vst.msk [vmem:[#allocation2 + $0x18] sm:$0xf] %vm417_vm1, %v760_v50  ;;  %v345_v16 = vmul.f32 %v892_v51, %v1182_v23 }
  0xce   : > { %v763_v53 = vpack.c.bf16 %v346_v52, %v346_v52 }
  0xcf   : > { %v894_v54 = vpop.eup %893  ;;  %v762_v55 = vpack.c.bf16 %v345_v16, %v345_v16 }
  0xd0   : > { %v896_v56 = vpop.eup %895  ;;  %427 = vst.msk [vmem:[#allocation2 + $0x24] sm:$0xf] %vm417_vm1, %v763_v53  ;;  %v348_v17 = vmul.f32 %v894_v54, %v1191_v28 }
  0xd1   : > { %426 = vst.msk [vmem:[#allocation2 + $0x20] sm:$0xf] %vm417_vm1, %v762_v55  ;;  %v347_v57 = vmul.f32 %v896_v56, %v1194_v29 }
  0xd2   : > { %v765_v58 = vpack.c.bf16 %v348_v17, %v348_v17 }
  0xd3   : > { %v898_v59 = vpop.eup %897  ;;  %v764_v60 = vpack.c.bf16 %v347_v57, %v347_v57 }
  0xd4   : > { %v900_v22 = vpop.eup %899  ;;  %429 = vst.msk [vmem:[#allocation2 + $0x2c] sm:$0xf] %vm417_vm1, %v765_v58  ;;  %v350_v23 = vmul.f32 %v898_v59, %v1203_v34 }
  0xd5   : > { %428 = vst.msk [vmem:[#allocation2 + $0x28] sm:$0xf] %vm417_vm1, %v764_v60  ;;  %v349_v61 = vmul.f32 %v900_v22, %v1206_v35 }
  0xd6   : > { %v767_v62 = vpack.c.bf16 %v350_v23, %v350_v23 }
  0xd7   : > { %v902_v63 = vpop.eup %901  ;;  %v766_v3 = vpack.c.bf16 %v349_v61, %v349_v61 }
  0xd8   : > { %v904_v28 = vpop.eup %903  ;;  %431 = vst.msk [vmem:[#allocation2 + $0x34] sm:$0xf] %vm417_vm1, %v767_v62  ;;  %v352_v29 = vmul.f32 %v902_v63, %v1215_v40 }
  0xd9   : > { %430 = vst.msk [vmem:[#allocation2 + $0x30] sm:$0xf] %vm417_vm1, %v766_v3  ;;  %v351_v4 = vmul.f32 %v904_v28, %v1218_v41 }
  0xda   : > { %v769_v5 = vpack.c.bf16 %v352_v29, %v352_v29 }
  0xdb   : > { %v768_v7 = vpack.c.bf16 %v351_v4, %v351_v4 }
  0xdc   : > { %433 = vst.msk [vmem:[#allocation2 + $0x3c] sm:$0xf] %vm417_vm1, %v769_v5 }
  0xdd   : > { %432 = vst.msk [vmem:[#allocation2 + $0x38] sm:$0xf] %vm417_vm1, %v768_v7 }
  0xde PF: > { %v434_v34 = vld [vmem:[%s1118_s11] sm:$0xff]  ;;  %vm436_vm2 = vcmask 261120   ;;  %v1012_v11 = vmov 0.0   ;;  %v908_v14 = vld [vmem:[#allocation2 + $0x28] sm:$0xff]   ;;  %vm1013_vm3 = vmmov 0   ;;  %v910_v20 = vld [vmem:[#allocation2 + $0x18] sm:$0xff]   ;;  %v568_v38 = vlaneseq }
  0xdf   : > { %v435_v10 = vmul.f32 %v434_v34, %v434_v34  ;;  %779 = vmatprep.subr.bf16.mxu0 %v1012_v11  ;;  %v519_v15 = vsel %vm436_vm2, %v908_v14, 0  ;;  %795 = vmatprep.mubr.msk.bf16.mxu0 %vm1013_vm3, %v1012_v11  ;;  %v909_v18 = vld [vmem:[#allocation2 + $0x20] sm:$0xff]   ;;  %v513_v21 = vsel %vm436_vm2, %v910_v20, 0  ;;  %v1014_v25 = vmov 0   ;;  %v911_v26 = vld [vmem:[#allocation2 + $0x10] sm:$0xff]   ;;  %v912_v27 = vld [vmem:[#allocation2 + $0x8] sm:$0xff]  }
  0xe0   : > { %v907_v41 = vld [vmem:[#allocation2 + $0x30] sm:$0xff]   ;;  %v516_v19 = vsel %vm436_vm2, %v909_v18, 0  ;;  %v567_v24 = vld [vmem:[%s1128_s4] sm:$0xff]  ;;  %905 = vset.pattern.permute.xlu0 %v1014_v25  ;;  %v510_v0 = vsel %vm436_vm2, %v911_v26, 0  ;;  %v507_v1 = vsel %vm436_vm2, %v912_v27, 0  ;;  %s747_s4 = sshll.u32 %s998_s16, 7 }
  0xe1   : > { %v437_v12 = vsel %vm436_vm2, %v435_v10, 0.0  ;;  %v522_v13 = vsel %vm436_vm2, %v907_v41, 0  ;;  %v913_v30 = vld [vmem:[#allocation2] sm:$0xff]   ;;  %v569_v39 = vand.u32 127, %v568_v38  ;;  %v571_v6 = vstv %s747_s4  ;;  %s750_s6 = sshll.u32 %s994_s15, 1  ;;  %s615_s9 = sshll.u32 %s204_s23, 4  ;;  %s616_s9 = int_to_ptr.vmem [resolvable:$true] %s615_s9 }
  0xe2   : > { %438 = vadd.xlane.f32.xlu0 %v437_v12  ;;  %v504_v31 = vsel %vm436_vm2, %v913_v30, 0  ;;  %s611_s7 = sadd.s32 %s998_s16, %s750_s6  ;;  %s1335_s20 = sand.u32 1, %s986_s13  }
  0xe3   : > { %v572_v42 = vadd.s32 %v571_v6, %v569_v39  ;;  %s751_s8 = sshll.u32 %s611_s7, 7  ;;  %s600_s21 = scalar_lea.sflag [#allocation4], %s1335_s20 }
  0xe4   : > { %v906_v35 = vld [vmem:[#allocation2 + $0x38] sm:$0xff]   ;;  %s613_s11 = scalar_lea.hbm %s1329_s3, %s751_s8  ;;  %s918_s16 = scalar_lea.vmem %s616_s9, 128 }
  0xe5   : > { %v525_v40 = vsel %vm436_vm2, %v906_v35, 0  ;;  %p919_p1 = scmp.ne.s32.totalorder %s616_s9, %s918_s16  ;;  %s1015_s24 = smov [#allocation3]  }
  0xe6   : > { %780 = vmatpush3.bf16.xpose.msra.mxu0 %v525_v40  ;;  %s922_s27 = sshll.u32 %s1015_s24, 4  ;;  %s923_s27 = int_to_ptr.vmem [resolvable:$false] %s922_s27 }
  0xe7   : > { %781 = vmatprep.subr.bf16.mxu0 %v1012_v11  ;;  %p920_p2 = pnand %p919_p1, %p1087_p3  ;;  %s924_s28 = scalar_lea.vmem %s923_s27, 256 }
  0xe8   : > { %p925_p5 = scmp.lt.s32.totalorder %s616_s9, %s923_s27  ;;  %p926_p6 = scmp.lt.s32.totalorder %s924_s28, %s918_s16 }
  0xe9   : > { %p921_p4 = pneg %p920_p2 }
  0xea   : > { %p927_p7 = por %p926_p6, %p925_p5 }
  0xec   : > { %p928_p9 = pnand %p927_p7, %p921_p4 }
  0xee   : > { %782 = vmatpush3.bf16.xpose.msra.mxu0 %v522_v13 }
  0xef   : > { %783 = vmatprep.subr.bf16.mxu0 %v1012_v11 }
  0xf6   : > { %784 = vmatpush3.bf16.xpose.msra.mxu0 %v519_v15 }
  0xf7   : > { %785 = vmatprep.subr.bf16.mxu0 %v1012_v11 }
  0xf8   : > { %574 = vperm.xlu0 %905, %v567_v24  }
  0xfe   : > { %786 = vmatpush3.bf16.xpose.msra.mxu0 %v516_v19 }
  0xff   : > { %787 = vmatprep.subr.bf16.mxu0 %v1012_v11 }
 0x106   : > { %788 = vmatpush3.bf16.xpose.msra.mxu0 %v513_v21 }
 0x107   : > { %789 = vmatprep.subr.bf16.mxu0 %v1012_v11 }
 0x10e   : > { %790 = vmatpush3.bf16.xpose.msra.mxu0 %v510_v0 }
 0x10f   : > { %791 = vmatprep.subr.bf16.mxu0 %v1012_v11 }
 0x116   : > { %792 = vmatpush3.bf16.xpose.msra.mxu0 %v507_v1 }
 0x117   : > { %793 = vmatprep.subr.bf16.mxu0 %v1012_v11 }
 0x11e   : > { %794 = vmatpush3.bf16.xpose.msra.mxu0 %v504_v31 }
 0x16b   : > { %v439_v32 = vpop.xlane.xlu0 %438 }
 0x16c   : > { %v440_v33 = vmax.f32 %v439_v32, 1e-24 }
 0x16e   : > { %914 = vrsqrt.f32 %v440_v33 }
 0x173   : > { %v575_v43 = vpop.permute.xlu0 %574 }
 0x174   : > { %vm576_vm4 = vcmp.eq.s32.totalorder %v572_v42, %v575_v43 }
 0x17b   : > { %v915_v36 = vpop.eup %914 }
 0x17c   : > { %v442_v37 = vmul.f32 %v915_v36, %v434_v34 }
 0x17e   : > { %v443_v2 = vpack.c.bf16 %v442_v37, %v442_v37 }
 0x180   : > { %796 = vmatmul.mubr.msk.bf16.vlgmr.msra.gmra.mxu0 %vm436_vm2, %v443_v2 }
 0x240   : > { %v561_v44 = vpop.f32.mrf.mxu0 }
 0x241   : > { %v577_v45 = vsel %vm576_vm4, %v561_v44, 0.0 }
 0x242   : > { %v797_v46 = vpop.f32.mrf.mxu0  ;;  %578 = vadd.xlane.f32.xlu1 %v577_v45 }
 0x244   : > { %v564_v47 = vpop.f32.mrf.mxu0 }
 0x246   : > { %v798_v8 = vpop.f32.mrf.mxu0 }
 0x2cb   : > { %v579_v48 = vpop.xlane.xlu1 %578 }
 0x2cc   : > { %v580_v49 = vmul.f32 %v579_v48, %v579_v48  ;;  %v590_v55 = vmul.f32 0.87758255, %v579_v48  ;;  %v748_v57 = vadd.f32 -0.23971277, %v579_v48  ;;  %vm593_vm7 = vcmp.gt.f32.partialorder %v579_v48, -0.87758255 }
 0x2ce   : > { %v581_v9 = vsub.f32 1.0, %v580_v49 }
 0x2d0   : > { %v582_v50 = vmax.f32 %v581_v9, 0.0 }
 0x2d2   : > { %916 = vrsqrt.f32 %v582_v50  ;;  %vm585_vm5 = vcmp.eq.f32.partialorder %v582_v50, inf  ;;  %v588_v16 = vand.u32 2147483648, %v582_v50  ;;  %vm587_vm6 = vcmp.eq.f32.partialorder %v582_v50, 0.0 }
 0x2df   : > { %v917_v51 = vpop.eup %916 }
 0x2e0   : > { %v584_v52 = vmul.f32 %v917_v51, %v582_v50 }
 0x2e2   : > { %v586_v53 = vsel %vm585_vm5, %v582_v50, %v584_v52 }
 0x2e3   : > { %v589_v54 = vsel %vm587_vm6, %v588_v16, %v586_v53 }
 0x2e4   : > { %v591_v56 = vmul.f32 0.47942555, %v589_v54 }
 0x2e6   : > { %v592_v17 = vsub.f32 %v590_v55, %v591_v56 }
 0x2e8   : > { %v595_v58 = vsel %vm593_vm7, %v592_v17, %v748_v57 }
 0x2e9   : > { %v596_v59 = vsel %vm576_vm4, %v595_v58, %v561_v44 }
 0x2ea   : > { %v597_v60 = vmul.f32 30.0, %v596_v59 }
 0x2ec   : > { %598 = vst [vmem:[%s204_s23] sm:$0xff] %v597_v60 }
 0x2ed   : > { %931 = shalt.err (!%p928_p9)
}
 0x2ee   : > { %s932_s29 = scalar_lea.hbm %s613_s11, 128  ;;  %s936_s4 = scalar_lea.hbm %s1329_s3, 512 }
 0x2ef   : > { %p933_p10 = scmp.ne.s32.totalorder %s613_s11, %s932_s29  ;;  %p937_p13 = scmp.lt.s32.totalorder %s613_s11, %s1329_s3 }
 0x2f0   : > { %p938_p0 = scmp.lt.s32.totalorder %s936_s4, %s932_s29 }
 0x2f1   : > { %p934_p11 = pnand %p933_p10, %p1087_p3 }
 0x2f2   : > { %p939_p1 = por %p938_p0, %p937_p13 }
 0x2f3   : > { %p935_p12 = pneg %p934_p11 }
 0x2f5   : > { %p940_p2 = pnand %p939_p1, %p935_p12 }
 0x2f7   : > { %943 = shalt.err (!%p940_p2)
}
 0x2f8   : > { %799 = dma.vmem_to_hbm [thread:$0]  (%p1087_p3), %s616_s9, 128, %s613_s11, %s600_s21  }
 0x2f9 PF: > { %p805_p4 = scmp.ge.s32.totalorder %s1010_s19, 2  ;;  %s627_s8 = sand.u32 1, %s982_s12  }
 0x2fa   : > { %s628_s15 = scalar_lea.sflag [#allocation4], %s627_s8 }
 0x2fb   : > { %p802_p5 = pnand %p805_p4, %p1096_p8 }
 0x2fd   : > { %p803_p6 = pneg %p802_p5 }
 0x2ff   : > { %977 = dma.done.wait (%p803_p6), %s628_s15, 128  }
 0x300   : > { %979 = vsyncadd (%p803_p6), %s628_s15, 4294967168  ;;  %s16_s19 = sadd.s32 1, %s1010_s19   ;;  %s1336_s25 = sld [smem:[#allocation6_spill]] }
 0x301   : > { %p13_p7 = scmp.ge.s32.totalorder %s16_s19, 6   ;;  %s1337_s12 = smov %s986_s13 }
 0x302   : > { %s1338_s13 = smov %s990_s14  ;;  %s1339_s14 = smov %s1105_s30 }
 0x303   : > { %s1340_s15 = smov %s1002_s17  ;;  %s1341_s16 = smov %s1006_s18 }
 0x304   : > { %s1342_s17 = smov %s1345_s22  ;;  %15 = sbr.rel (!%p13_p7) target bundleno = 5 (0x5), region = 77 }
 0x306   : > { %s1343_s18 = smov %s1336_s25 }
 0x309   :  { %633 = vsyncpa [#allocation4], 1 }
 0x30a   :  { %635 = vsyncpa [#allocation4 + $0x1], 1 }

</bundles_post_ra>
